<compile_context>
chip_gen: v5e
topology: v5e:2x2
jax: 0.10.0
libtpu: 0.0.40
codegen_flags: <defaults>
</compile_context>

<pallas_src>
import functools

import jax
import jax.numpy as jnp
from jax import lax
from jax.experimental import pallas as pl
from jax.experimental.pallas import tpu as pltpu


def _dice_partial_kernel(x_ref, t_ref, inter_out_ref, union_out_ref,
                         inter_acc, union_acc, *,
                         n_valid: int, block_rows: int, kb_per_split: int,
                         needs_mask: bool):
    split = pl.program_id(0)
    k = pl.program_id(1)

    @pl.when(k == 0)
    def _init():
        inter_acc[...] = jnp.zeros_like(inter_acc)
        union_acc[...] = jnp.zeros_like(union_acc)

    x = x_ref[...].astype(jnp.float32)
    t = t_ref[...].astype(jnp.float32)
    # sigmoid(x) == 0.5 * (tanh(x/2) + 1): one EUP transcendental, no VPU selects.
    p = 0.5 * (jnp.tanh(0.5 * x) + 1.0)

    if needs_mask:
        # Mask by true flat element index: covers row-block tails, duplicate
        # blocks from the split axis, and a lane-padded last row, all at once.
        row_start = (split * kb_per_split + k) * block_rows
        rows = lax.broadcasted_iota(jnp.int32, x.shape, dimension=1)
        lanes = lax.broadcasted_iota(jnp.int32, x.shape, dimension=2)
        elem = (row_start + rows) * 128 + lanes
        valid = elem < n_valid
        p = jnp.where(valid, p, 0.0)
        t = jnp.where(valid, t, 0.0)

    # Hot path: pure element-wise VPU adds into full-tile accumulators
    # (no per-step cross-lane/sublane reduce, no narrow masked stores).
    inter_acc[...] += p * t
    union_acc[...] += p + t

    @pl.when(k == pl.num_programs(1) - 1)
    def _finalize():
        # One sublane reduce per split; lane reduce is done on the tiny
        # (splits, B, 128) partials in the wrapper.
        inter_out_ref[0] = jnp.sum(inter_acc[...], axis=1)
        union_out_ref[0] = jnp.sum(union_acc[...], axis=1)


def dice_loss(logits, targets, smooth: float = 1.0, *,
              block_rows: int = 512, num_splits: int = 2, buffer_count: int = 2):
    """Pallas implementation of DiceLoss.forward (returns a scalar).

    Accepts f32 or bf16 inputs (upcast in-kernel). block_rows is the number of
    128-wide rows per grid step (multiple of 8); sweep 256..2048 for peak BW.
    """
    assert logits.shape == targets.shape
    b = logits.shape[0]
    x = logits.reshape(b, -1)
    t = targets.reshape(b, -1)
    n_valid = x.shape[1]

    # Lane padding only when N is not a multiple of 128 (rare for NCHW seg maps).
    # The pad *value* is irrelevant: the kernel masks by true element index.
    lane_pad = (-n_valid) % 128
    if lane_pad:
        x = jnp.pad(x, ((0, 0), (0, lane_pad)))
        t = jnp.pad(t, ((0, 0), (0, lane_pad)))
    n_rows = (n_valid + lane_pad) // 128
    x = x.reshape(b, n_rows, 128)
    t = t.reshape(b, n_rows, 128)

    if n_rows <= block_rows:
        br = n_rows                      # full-extent block (always legal)
    else:
        assert block_rows % 8 == 0, "block_rows must be a multiple of 8"
        br = block_rows
    num_row_blocks = pl.cdiv(n_rows, br)
    s = num_splits if num_row_blocks >= num_splits else 1
    kb = pl.cdiv(num_row_blocks, s)

    needs_mask = (lane_pad != 0) or (num_row_blocks * br != n_rows) \
        or (s * kb != num_row_blocks)

    def in_index_map(split, k):
        rb = split * kb + k
        # Clamp duplicate tail blocks of the last split into bounds; their
        # contribution is zeroed by the in-kernel element mask.
        return (0, jnp.minimum(rb, num_row_blocks - 1), 0)

    spec_kwargs = {}
    if buffer_count != 2:
        spec_kwargs = dict(pipeline_mode=pl.Buffered(buffer_count))
    in_specs = [pl.BlockSpec((b, br, 128), in_index_map, **spec_kwargs),
                pl.BlockSpec((b, br, 128), in_index_map, **spec_kwargs)]
    out_specs = [pl.BlockSpec((1, b, 128), lambda split, k: (split, 0, 0)),
                 pl.BlockSpec((1, b, 128), lambda split, k: (split, 0, 0))]
    out_shape = (jax.ShapeDtypeStruct((s, b, 128), jnp.float32),
                 jax.ShapeDtypeStruct((s, b, 128), jnp.float32))

    n_elems = b * n_valid
    cost = pl.CostEstimate(
        flops=6 * n_elems,
        transcendentals=n_elems,
        bytes_accessed=n_elems * (x.dtype.itemsize + t.dtype.itemsize)
        + 2 * s * b * 128 * 4,
    )

    kernel = functools.partial(
        _dice_partial_kernel, n_valid=n_valid, block_rows=br,
        kb_per_split=kb, needs_mask=needs_mask)

    inter_p, union_p = pl.pallas_call(
        kernel,
        out_shape=out_shape,
        grid_spec=pltpu.PrefetchScalarGridSpec(
            num_scalar_prefetch=0,
            grid=(s, kb),
            in_specs=in_specs,
            out_specs=out_specs,
            scratch_shapes=[pltpu.VMEM((b, br, 128), jnp.float32),
                            pltpu.VMEM((b, br, 128), jnp.float32)],
        ),
        compiler_params=pltpu.CompilerParams(
            dimension_semantics=("parallel", "arbitrary"),
        ),
        cost_estimate=cost,
    )(x, t)

    # Tiny epilogue: combine per-split, per-lane partials and form the loss.
    inter = jnp.sum(inter_p, axis=(0, 2))
    union = jnp.sum(union_p, axis=(0, 2))
    dice = (2.0 * inter + smooth) / (union + smooth)
    return 1.0 - jnp.mean(dice)


def dice_loss_ref(logits, targets, smooth: float = 1.0):
    """Pure-JAX reference matching the PyTorch DiceLoss module."""
    b = targets.shape[0]
    probs = jax.nn.sigmoid(logits.astype(jnp.float32)).reshape(b, -1)
    t = targets.astype(jnp.float32).reshape(b, -1)
    intersection = jnp.sum(probs * t, axis=1)
    union = jnp.sum(probs, axis=1) + jnp.sum(t, axis=1)
    dice = (2.0 * intersection + smooth) / (union + smooth)
    return 1.0 - jnp.mean(dice)


if __name__ == "__main__":
    key = jax.random.PRNGKey(0)
    k1, k2, k3, k4 = jax.random.split(key, 4)

    # 1) small segmentation-like shapes, f32, exact-fit (no mask) path.
    B, C, H, W = 2, 4, 16, 16
    logits = jax.random.normal(k1, (B, C, H, W), dtype=jnp.float32)
    targets = (jax.random.uniform(k2, (B, C, H, W)) > 0.5).astype(jnp.float32)
    out = jax.block_until_ready(dice_loss(logits, targets, smooth=1.0))
    ref = jax.block_until_ready(dice_loss_ref(logits, targets, smooth=1.0))
    assert jnp.allclose(out, ref, atol=1e-5, rtol=1e-5), (out, ref)

    # 2) larger map with a small block_rows to exercise the 2-way split
    #    ("parallel" axis) and the in-kernel tail mask.
    logits2 = jax.random.normal(k3, (2, 4, 32, 32), dtype=jnp.float32)
    targets2 = (jax.random.uniform(k4, (2, 4, 32, 32)) > 0.5).astype(jnp.float32)
    out2 = jax.block_until_ready(dice_loss(logits2, targets2, block_rows=24))
    ref2 = jax.block_until_ready(dice_loss_ref(logits2, targets2))
    assert jnp.allclose(out2, ref2, atol=1e-5, rtol=1e-5), (out2, ref2)

    # 3) bf16 inputs end-to-end (half the HBM bytes; upcast inside the kernel).
    out3 = jax.block_until_ready(
        dice_loss(logits.astype(jnp.bfloat16), targets.astype(jnp.bfloat16)))
    ref3 = jax.block_until_ready(
        dice_loss_ref(logits.astype(jnp.bfloat16), targets.astype(jnp.bfloat16)))
    assert jnp.allclose(out3, ref3, atol=1e-3, rtol=1e-3), (out3, ref3)

    # 4) N not a multiple of 128: lane pad + in-kernel element mask.
    logits4 = jax.random.normal(k1, (2, 3, 10, 10), dtype=jnp.float32)
    targets4 = (jax.random.uniform(k2, (2, 3, 10, 10)) > 0.5).astype(jnp.float32)
    out4 = jax.block_until_ready(dice_loss(logits4, targets4))
    ref4 = jax.block_until_ready(dice_loss_ref(logits4, targets4))
    assert jnp.allclose(out4, ref4, atol=1e-5, rtol=1e-5), (out4, ref4)

    print("KERNEL_OK")
</pallas_src>

<mosaic_0001>
module attributes {stable_mosaic.version = 11 : i64} {
  func.func @_dice_partial_kernel(%arg0: i32, %arg1: i32, %arg2: memref<2x8x128xf32, #tpu.memory_space<vmem>>, %arg3: memref<2x8x128xf32, #tpu.memory_space<vmem>>, %arg4: memref<1x2x128xf32, #tpu.memory_space<vmem>>, %arg5: memref<1x2x128xf32, #tpu.memory_space<vmem>>, %arg6: memref<2x8x128xf32, #tpu.memory_space<vmem>>, %arg7: memref<2x8x128xf32, #tpu.memory_space<vmem>>) attributes {dimension_semantics = [#tpu.dimension_semantics<parallel>, #tpu.dimension_semantics<arbitrary>], iteration_bounds = array<i64: 1, 1>, scalar_prefetch = 0 : i64, scratch_operands = 2 : i64, tpu.core_type = #tpu.core_type<tc>, window_params = [{transform_indices = @transform_0, window_bounds = array<i64: 2, 8, 128>}, {transform_indices = @transform_1, window_bounds = array<i64: 2, 8, 128>}, {transform_indices = @transform_2, window_bounds = array<i64: 1, 2, 128>}, {transform_indices = @transform_3, window_bounds = array<i64: 1, 2, 128>}]} {
    %c0_i32 = arith.constant 0 : i32
    %0 = arith.cmpi eq, %arg1, %c0_i32 : i32
    %1 = arith.extui %0 : i1 to i32
    %c0_i32_0 = arith.constant 0 : i32
    %2 = arith.cmpi ne, %1, %c0_i32_0 : i32
    scf.if %2 {
      %cst_22 = arith.constant 0.000000e+00 : f32
      %23 = vector.broadcast %cst_22 : f32 to vector<2x8x128xf32>
      %c0_23 = arith.constant 0 : index
      %c0_24 = arith.constant 0 : index
      %c0_25 = arith.constant 0 : index
      %24 = vector.load %arg6[%c0_23, %c0_24, %c0_25] : memref<2x8x128xf32, #tpu.memory_space<vmem>>, vector<2x8x128xf32>
      tpu.vector_store %arg6[%c0_23, %c0_24, %c0_25], %23 {strides = array<i32>} : memref<2x8x128xf32, #tpu.memory_space<vmem>>, vector<2x8x128xf32>,
      %cst_26 = arith.constant 0.000000e+00 : f32
      %25 = vector.broadcast %cst_26 : f32 to vector<2x8x128xf32>
      %c0_27 = arith.constant 0 : index
      %c0_28 = arith.constant 0 : index
      %c0_29 = arith.constant 0 : index
      %26 = vector.load %arg7[%c0_27, %c0_28, %c0_29] : memref<2x8x128xf32, #tpu.memory_space<vmem>>, vector<2x8x128xf32>
      tpu.vector_store %arg7[%c0_27, %c0_28, %c0_29], %25 {strides = array<i32>} : memref<2x8x128xf32, #tpu.memory_space<vmem>>, vector<2x8x128xf32>,
    } else {
    }
    %c0 = arith.constant 0 : index
    %c0_1 = arith.constant 0 : index
    %c0_2 = arith.constant 0 : index
    %3 = vector.load %arg2[%c0, %c0_1, %c0_2] : memref<2x8x128xf32, #tpu.memory_space<vmem>>, vector<2x8x128xf32>
    %c0_3 = arith.constant 0 : index
    %c0_4 = arith.constant 0 : index
    %c0_5 = arith.constant 0 : index
    %4 = vector.load %arg3[%c0_3, %c0_4, %c0_5] : memref<2x8x128xf32, #tpu.memory_space<vmem>>, vector<2x8x128xf32>
    %cst = arith.constant 5.000000e-01 : f32
    %5 = vector.broadcast %cst : f32 to vector<2x8x128xf32>
    %6 = arith.mulf %5, %3 : vector<2x8x128xf32>
    %7 = math.tanh %6 : vector<2x8x128xf32>
    %cst_6 = arith.constant 1.000000e+00 : f32
    %8 = vector.broadcast %cst_6 : f32 to vector<2x8x128xf32>
    %9 = arith.addf %7, %8 : vector<2x8x128xf32>
    %cst_7 = arith.constant 5.000000e-01 : f32
    %10 = vector.broadcast %cst_7 : f32 to vector<2x8x128xf32>
    %11 = arith.mulf %10, %9 : vector<2x8x128xf32>
    %c0_8 = arith.constant 0 : index
    %c0_9 = arith.constant 0 : index
    %c0_10 = arith.constant 0 : index
    %12 = vector.load %arg6[%c0_8, %c0_9, %c0_10] : memref<2x8x128xf32, #tpu.memory_space<vmem>>, vector<2x8x128xf32>
    %13 = arith.mulf %11, %4 : vector<2x8x128xf32>
    %14 = arith.addf %12, %13 : vector<2x8x128xf32>
    %c0_11 = arith.constant 0 : index
    %c0_12 = arith.constant 0 : index
    %c0_13 = arith.constant 0 : index
    %15 = vector.load %arg6[%c0_11, %c0_12, %c0_13] : memref<2x8x128xf32, #tpu.memory_space<vmem>>, vector<2x8x128xf32>
    tpu.vector_store %arg6[%c0_11, %c0_12, %c0_13], %14 {strides = array<i32>} : memref<2x8x128xf32, #tpu.memory_space<vmem>>, vector<2x8x128xf32>,
    %c0_14 = arith.constant 0 : index
    %c0_15 = arith.constant 0 : index
    %c0_16 = arith.constant 0 : index
    %16 = vector.load %arg7[%c0_14, %c0_15, %c0_16] : memref<2x8x128xf32, #tpu.memory_space<vmem>>, vector<2x8x128xf32>
    %17 = arith.addf %11, %4 : vector<2x8x128xf32>
    %18 = arith.addf %16, %17 : vector<2x8x128xf32>
    %c0_17 = arith.constant 0 : index
    %c0_18 = arith.constant 0 : index
    %c0_19 = arith.constant 0 : index
    %19 = vector.load %arg7[%c0_17, %c0_18, %c0_19] : memref<2x8x128xf32, #tpu.memory_space<vmem>>, vector<2x8x128xf32>
    tpu.vector_store %arg7[%c0_17, %c0_18, %c0_19], %18 {strides = array<i32>} : memref<2x8x128xf32, #tpu.memory_space<vmem>>, vector<2x8x128xf32>,
    %c0_i32_20 = arith.constant 0 : i32
    %20 = arith.cmpi eq, %arg1, %c0_i32_20 : i32
    %21 = arith.extui %20 : i1 to i32
    %c0_i32_21 = arith.constant 0 : i32
    %22 = arith.cmpi ne, %21, %c0_i32_21 : i32
    scf.if %22 {
      %c0_22 = arith.constant 0 : index
      %c0_23 = arith.constant 0 : index
      %c0_24 = arith.constant 0 : index
      %23 = vector.load %arg6[%c0_22, %c0_23, %c0_24] : memref<2x8x128xf32, #tpu.memory_space<vmem>>, vector<2x8x128xf32>
      %cst_25 = arith.constant dense<0.000000e+00> : vector<2x128xf32>
      %24 = vector.multi_reduction <add>, %23, %cst_25 [1] : vector<2x8x128xf32> to vector<2x128xf32>
      %c0_26 = arith.constant 0 : index
      %c0_27 = arith.constant 0 : index
      %c0_28 = arith.constant 0 : index
      %25 = vector.load %arg4[%c0_26, %c0_27, %c0_28] : memref<1x2x128xf32, #tpu.memory_space<vmem>>, vector<1x2x128xf32>
      %26 = vector.shape_cast %25 : vector<1x2x128xf32> to vector<2x128xf32>
      %27 = vector.shape_cast %24 : vector<2x128xf32> to vector<1x2x128xf32>
      tpu.vector_store %arg4[%c0_26, %c0_27, %c0_28], %27 {strides = array<i32>} : memref<1x2x128xf32, #tpu.memory_space<vmem>>, vector<1x2x128xf32>,
      %c0_29 = arith.constant 0 : index
      %c0_30 = arith.constant 0 : index
      %c0_31 = arith.constant 0 : index
      %28 = vector.load %arg7[%c0_29, %c0_30, %c0_31] : memref<2x8x128xf32, #tpu.memory_space<vmem>>, vector<2x8x128xf32>
      %cst_32 = arith.constant dense<0.000000e+00> : vector<2x128xf32>
      %29 = vector.multi_reduction <add>, %28, %cst_32 [1] : vector<2x8x128xf32> to vector<2x128xf32>
      %c0_33 = arith.constant 0 : index
      %c0_34 = arith.constant 0 : index
      %c0_35 = arith.constant 0 : index
      %30 = vector.load %arg5[%c0_33, %c0_34, %c0_35] : memref<1x2x128xf32, #tpu.memory_space<vmem>>, vector<1x2x128xf32>
      %31 = vector.shape_cast %30 : vector<1x2x128xf32> to vector<2x128xf32>
      %32 = vector.shape_cast %29 : vector<2x128xf32> to vector<1x2x128xf32>
      tpu.vector_store %arg5[%c0_33, %c0_34, %c0_35], %32 {strides = array<i32>} : memref<1x2x128xf32, #tpu.memory_space<vmem>>, vector<1x2x128xf32>,
    } else {
    }
    return
  }
  func.func @transform_0(%arg0: i32, %arg1: i32) -> (i32, i32, i32) {
    %c1_i32 = arith.constant 1 : i32
    %0 = arith.muli %arg0, %c1_i32 : i32
    %1 = arith.addi %0, %arg1 : i32
    %c0_i32 = arith.constant 0 : i32
    %2 = arith.minsi %1, %c0_i32 : i32
    %c0_i32_0 = arith.constant 0 : i32
    %c0_i32_1 = arith.constant 0 : i32
    %c0_i32_2 = arith.constant 0 : i32
    return %c0_i32_0, %2, %c0_i32_1 : i32, i32, i32
  }
  func.func @transform_1(%arg0: i32, %arg1: i32) -> (i32, i32, i32) {
    %c1_i32 = arith.constant 1 : i32
    %0 = arith.muli %arg0, %c1_i32 : i32
    %1 = arith.addi %0, %arg1 : i32
    %c0_i32 = arith.constant 0 : i32
    %2 = arith.minsi %1, %c0_i32 : i32
    %c0_i32_0 = arith.constant 0 : i32
    %c0_i32_1 = arith.constant 0 : i32
    %c0_i32_2 = arith.constant 0 : i32
    return %c0_i32_0, %2, %c0_i32_1 : i32, i32, i32
  }
  func.func @transform_2(%arg0: i32, %arg1: i32) -> (i32, i32, i32) {
    %c0_i32 = arith.constant 0 : i32
    %c0_i32_0 = arith.constant 0 : i32
    %c0_i32_1 = arith.constant 0 : i32
    return %arg0, %c0_i32, %c0_i32_0 : i32, i32, i32
  }
  func.func @transform_3(%arg0: i32, %arg1: i32) -> (i32, i32, i32) {
    %c0_i32 = arith.constant 0 : i32
    %c0_i32_0 = arith.constant 0 : i32
    %c0_i32_1 = arith.constant 0 : i32
    return %arg0, %c0_i32, %c0_i32_0 : i32, i32, i32
  }
}

</mosaic_0001>

<bundles_post_ra>
// kernel: tpu_custom_call.1
= control target key start
LH: loop header
LB: loop body
LE: loop exit
PB: predicated region body
PF: predicated region fallthrough
CT: control target
= control target key end

     0   :  { %9 = vsyncpa [#allocation5], 0  ;;  %s331_s0 = inlined_call_operand.hbm [shape: f32[2,8,128], index: 0, kind: input, shape index: {}]   ;;  %s332_s1 = inlined_call_operand.hbm [shape: f32[2,8,128], index: 1, kind: input, shape index: {}]   ;;  %s333_s2 = inlined_call_operand.hbm [shape: f32[1,2,128], index: 2, kind: output, shape index: {0}]   ;;  %s334_s3 = inlined_call_operand.hbm [shape: f32[1,2,128], index: 3, kind: output, shape index: {1}]  }
   0x1   :  { %10 = vsyncpa [#allocation8], 0 }
   0x2   :  { %11 = vsyncpa [#allocation6], 0 }
   0x3   :  { %12 = vsyncpa [#allocation11], 0  ;;  %s22_s14 = sshll.u32 %s331_s0, 4  ;;  %s293_s15 = smov [#allocation4]   ;;  %s23_s14 = int_to_ptr.hbm [resolvable:$true] %s22_s14 }
   0x4   :  { %s24_s16 = sshll.u32 %s293_s15, 4  ;;  %s40_s19 = sshll.u32 %s332_s1, 4  ;;  %s25_s16 = int_to_ptr.vmem [resolvable:$true] %s24_s16  ;;  %s41_s19 = int_to_ptr.hbm [resolvable:$true] %s40_s19 }
   0x5   :  { %s294_s20 = smov 128   ;;  %s295_s21 = smov 8  }
   0x6   :  { %30 = dma.hbm_to_vmem [thread:$0]  %s23_s14, 256, %s25_s16, [#allocation5], %s294_s20, %s294_s20, %s295_s21  }
   0x7   :  { %s296_s22 = smov [#allocation7]  }
   0x8   :  { %s42_s23 = sshll.u32 %s296_s22, 4  ;;  %s43_s23 = int_to_ptr.vmem [resolvable:$true] %s42_s23 }
   0x9   :  { %48 = dma.hbm_to_vmem [thread:$0]  %s41_s19, 256, %s43_s23, [#allocation8], %s294_s20, %s294_s20, %s295_s21  }
   0xa   :  { %285 = dma.done.wait [#allocation5], 256  }
   0xb   :  { %286 = vsyncadd [#allocation5], 4294967040 }
   0xc   :  { %287 = dma.done.wait [#allocation8], 256  }
   0xd   :  { %288 = vsyncadd [#allocation8], 4294967040  ;;  %v71_v0 = vld [vmem:[#allocation4] sm:$0xff]  ;;  %v72_v1 = vld [vmem:[#allocation4 + $0x8] sm:$0xff]  ;;  %s297_s0 = smov [#allocation9]   ;;  %s148_s26 = sshll.u32 %s333_s2, 4  ;;  %s149_s26 = int_to_ptr.hbm [resolvable:$true] %s148_s26 }
   0xe   :  { %v75_v2 = vmul.f32 0.5, %v71_v0  ;;  %v76_v3 = vmul.f32 0.5, %v72_v1  ;;  %v73_v7 = vld [vmem:[#allocation7] sm:$0xff]  ;;  %v74_v9 = vld [vmem:[#allocation7 + $0x8] sm:$0xff]  ;;  %s146_s1 = sshll.u32 %s297_s0, 4  ;;  %vm118_vm0 = vcmask 1041409   ;;  %s147_s1 = int_to_ptr.vmem [resolvable:$true] %s146_s1 }
   0xf   :  { %s298_s27 = smov [#allocation10]   ;;  %s159_s4 = sshll.u32 %s334_s3, 4  ;;  %s160_s4 = int_to_ptr.hbm [resolvable:$true] %s159_s4 }
  0x10   :  { %185 = vtanh.f32 %v75_v2  ;;  %s157_s28 = sshll.u32 %s298_s27, 4  ;;  %s158_s28 = int_to_ptr.vmem [resolvable:$true] %s157_s28 }
  0x11   :  { %187 = vtanh.f32 %v76_v3 }
  0x16   :  { %v186_v4 = vpop.eup %185 }
  0x17   :  { %v188_v5 = vpop.eup %187  ;;  %v79_v6 = vadd.f32 1.0, %v186_v4 }
  0x18   :  { %v80_v8 = vadd.f32 1.0, %v188_v5 }
  0x19   :  { %v81_v10 = vmul.f32 0.5, %v79_v6 }
  0x1a   :  { %v82_v11 = vmul.f32 0.5, %v80_v8 }
  0x1b   :  { %v85_v12 = vmul.f32 %v81_v10, %v73_v7  ;;  %v93_v13 = vadd.f32 %v81_v10, %v73_v7 }
  0x1c   :  { %v86_v14 = vmul.f32 %v82_v11, %v74_v9  ;;  %v94_v15 = vadd.f32 %v82_v11, %v74_v9 }
  0x1d   :  { %v104_v16 = vrot.slane %v85_v12, 4  ;;  %v124_v17 = vrot.slane %v93_v13, 4 }
  0x1e   :  { %v110_v18 = vrot.slane %v86_v14, 4  ;;  %v130_v19 = vrot.slane %v94_v15, 4 }
  0x1f   :  { %v105_v20 = vadd.f32 %v104_v16, %v85_v12  ;;  %v125_v21 = vadd.f32 %v124_v17, %v93_v13 }
  0x20   :  { %v111_v22 = vadd.f32 %v110_v18, %v86_v14  ;;  %v131_v23 = vadd.f32 %v130_v19, %v94_v15 }
  0x21   :  { %v106_v24 = vrot.slane %v105_v20, 2  ;;  %v126_v25 = vrot.slane %v125_v21, 2 }
  0x22   :  { %v112_v26 = vrot.slane %v111_v22, 2  ;;  %v132_v27 = vrot.slane %v131_v23, 2 }
  0x23   :  { %v107_v28 = vadd.f32 %v106_v24, %v105_v20  ;;  %v127_v29 = vadd.f32 %v126_v25, %v125_v21 }
  0x24   :  { %v113_v30 = vadd.f32 %v112_v26, %v111_v22  ;;  %v133_v31 = vadd.f32 %v132_v27, %v131_v23 }
  0x25   :  { %v108_v32 = vrot.slane %v107_v28, 1  ;;  %v128_v33 = vrot.slane %v127_v29, 1 }
  0x26   :  { %v114_v34 = vrot.slane %v113_v30, 1  ;;  %v134_v35 = vrot.slane %v133_v31, 1 }
  0x27   :  { %v109_v36 = vadd.f32 %v108_v32, %v107_v28  ;;  %v129_v37 = vadd.f32 %v128_v33, %v127_v29 }
  0x28   :  { %v115_v38 = vadd.f32 %v114_v34, %v113_v30  ;;  %v135_v39 = vadd.f32 %v134_v35, %v133_v31 }
  0x2a   :  { %v119_v40 = vsel %vm118_vm0, %v115_v38, %v109_v36  ;;  %v138_v41 = vsel %vm118_vm0, %v135_v39, %v129_v37 }
  0x2b   :  { %121 = vst [vmem:[#allocation9] sm:$0x3] %v119_v40 }
  0x2c   :  { %140 = vst [vmem:[#allocation10] sm:$0x3] %v138_v41  ;;  %151 = dma.vmem_to_hbm [thread:$0]  %s147_s1, 32, %s149_s26, [#allocation6]  }
  0x2d   :  { %162 = dma.vmem_to_hbm [thread:$0]  %s158_s28, 32, %s160_s4, [#allocation11]  }
  0x2e   :  { %289 = dma.done.wait [#allocation6], 32  }
  0x2f   :  { %290 = vsyncadd [#allocation6], 4294967264 }
  0x30   :  { %291 = dma.done.wait [#allocation11], 32  }
  0x31   :  { %292 = vsyncadd [#allocation11], 4294967264 }
  0x32   :  { %171 = vsyncpa [#allocation5], 1 }
  0x33   :  { %172 = vsyncpa [#allocation8], 1 }
  0x34   :  { %173 = vsyncpa [#allocation6], 1 }
  0x35   :  { %174 = vsyncpa [#allocation11], 1 }

</bundles_post_ra>
